<compile_context>
chip_gen: v7x
topology: tpu7x:2x2x1
jax: 0.10.0
libtpu: 0.0.40
codegen_flags: <defaults>
</compile_context>

<pallas_src>
import functools

import jax
import jax.numpy as jnp
from jax.experimental import pallas as pl
from jax.experimental.pallas import tpu as pltpu


def _round_up(n, m):
    return ((n + m - 1) // m) * m


def _tpu_generation():
    """(is_v7, has_bf16_eup, vmem_capacity_bytes) from the attached device."""
    try:
        kind = jax.devices()[0].device_kind.lower()
    except Exception:
        kind = ""
    is_v7 = "v7" in kind
    has_bf16_eup = ("v6" in kind) or is_v7          # v5e/v4 EUP has no bf16 path
    vmem_capacity = (64 if is_v7 else 128) * 1024 * 1024
    return is_v7, has_bf16_eup, vmem_capacity


def _autoencoder_kernel(x_ref,
                        wg_ref, bg_ref,
                        we_ref, be_ref,
                        wdh_ref, bdh_ref,
                        out_ref, *, act_dtype):
    """Fused forward for one (TB, num_q) batch tile. Weights are VMEM-resident."""
    bf16 = jnp.bfloat16
    x = x_ref[...].astype(bf16)                     # f32 tile -> bf16 MXU operand

    # h1 = ReLU(x @ Wg + bg)          -- f32 accumulation, f32 elementwise
    h1 = jnp.dot(x, wg_ref[...], preferred_element_type=jnp.float32)
    h1 = jnp.maximum(h1 + bg_ref[...], 0.0)

    # h2 = sigmoid(h1 @ We + be)      -- sigmoid in bf16 on v6e/v7x, f32 on v5e
    h2 = jnp.dot(h1.astype(bf16), we_ref[...], preferred_element_type=jnp.float32)
    h2 = jax.nn.sigmoid((h2 + be_ref[...]).astype(act_dtype))

    # out = sigmoid(h2 @ (Wd@Wh) + (bd@Wh + bh))   -- decode+h fused (no act between)
    o = jnp.dot(h2.astype(bf16), wdh_ref[...], preferred_element_type=jnp.float32)
    o = o + bdh_ref[...]
    out_ref[...] = jax.nn.sigmoid(o.astype(act_dtype)).astype(out_ref.dtype)


def autoencoder_forward(x, params, *, tile_batch=None):
    """x: [batch, num_question] float32. params: PyTorch-layout weights.

    Returns bf16 [batch, num_question]; upcast outside if f32 is needed.
    """
    batch, num_q = x.shape
    hidden = params["g_w"].shape[0]
    bottleneck = params["encode_w"].shape[0]

    is_v7, has_bf16_eup, vmem_capacity = _tpu_generation()

    # Inner (MXU-only) feature dims padded to lane-dense multiples of 128.
    hp = _round_up(hidden, 128)
    bp = _round_up(bottleneck, 128)

    if tile_batch is None:
        tile_batch = 512 if is_v7 else 1024

    # Batch tile: multiple of 16 (bf16 sublane packing on the output tile).
    tb = min(tile_batch, _round_up(batch, 16))
    if is_v7:
        # Ensure >=2 grid steps so the second TensorCore isn't idle.
        tb = min(tb, max(16, _round_up(pl.cdiv(batch, 2), 16)))
    tb = max(16, tb)

    # VMEM estimate: resident weights/biases counted ONCE (constant block
    # index -> fetched once), streamed x/out tiles double-buffered, plus
    # f32 intermediates.
    w_bytes = (2 * (num_q * hp + hp * bp + bp * num_q)      # bf16 weights
               + 4 * (hp + bp + num_q))                      # f32 biases

    def vmem_estimate(tb_):
        x_tile = tb_ * num_q * 4                             # f32 in
        o_tile = tb_ * num_q * 2                             # bf16 out
        inter = tb_ * (hp + bp) * 4                          # f32 activations
        return w_bytes + 2 * (x_tile + o_tile) + 2 * inter

    vmem_budget = int(vmem_capacity * 0.72)
    while tb > 16 and vmem_estimate(tb) > vmem_budget:
        tb = max(16, _round_up(tb // 2, 16))

    f32, bf16 = jnp.float32, jnp.bfloat16

    def pad2(a, r, c):
        return jnp.pad(a, ((0, r - a.shape[0]), (0, c - a.shape[1])))

    # PyTorch [out, in] -> [in, out]; fuse decode+h in f32 (exact up to f32).
    wg = pad2(params["g_w"].T.astype(f32), num_q, hp).astype(bf16)       # (num_q, hp)
    we = pad2(params["encode_w"].T.astype(f32), hp, bp).astype(bf16)     # (hp, bp)
    w_dh = params["decode_w"].T.astype(f32) @ params["h_w"].T.astype(f32)
    wdh = pad2(w_dh, bp, num_q).astype(bf16)                             # (bp, num_q)
    b_dh = params["decode_b"].astype(f32) @ params["h_w"].T.astype(f32) \
        + params["h_b"].astype(f32)

    bg = jnp.pad(params["g_b"].astype(f32), (0, hp - hidden)).reshape(1, hp)
    be = jnp.pad(params["encode_b"].astype(f32), (0, bp - bottleneck)).reshape(1, bp)
    bdh = b_dh.reshape(1, num_q)

    grid = (pl.cdiv(batch, tb),)

    def resident(shape):
        # Same block every grid step -> DMA'd once, stays VMEM-resident.
        return pl.BlockSpec(shape, lambda i: (0, 0))

    flops = int(2 * batch * (num_q * hp + hp * bp + bp * num_q))
    transcendentals = int(batch * (bp + num_q))
    bytes_accessed = int(batch * num_q * 4          # x read (f32)
                         + w_bytes                  # weights/biases
                         + batch * num_q * 2)       # out write (bf16)

    vmem_limit = int(min(int(vmem_capacity * 0.9),
                         max(32 * 1024 * 1024, vmem_estimate(tb) + (8 << 20))))

    kernel = functools.partial(
        _autoencoder_kernel,
        act_dtype=(bf16 if has_bf16_eup else f32))

    out = pl.pallas_call(
        kernel,
        out_shape=jax.ShapeDtypeStruct((batch, num_q), bf16),
        grid=grid,
        in_specs=[
            pl.BlockSpec((tb, num_q), lambda i: (i, 0)),   # x: streamed batch tiles
            resident((num_q, hp)), resident((1, hp)),      # g
            resident((hp, bp)), resident((1, bp)),         # encode
            resident((bp, num_q)), resident((1, num_q)),   # fused decode@h
        ],
        out_specs=pl.BlockSpec((tb, num_q), lambda i: (i, 0)),
        compiler_params=pltpu.CompilerParams(
            dimension_semantics=("parallel",),
            vmem_limit_bytes=vmem_limit),
        cost_estimate=pl.CostEstimate(flops=flops,
                                      transcendentals=transcendentals,
                                      bytes_accessed=bytes_accessed),
    )(x.astype(f32), wg, bg, we, be, wdh, bdh)

    return out  # bf16; caller upcasts if f32 is needed downstream


def _init_linear(key, out_features, in_features):
    """Deterministic init mimicking nn.Linear (uniform in +-1/sqrt(in))."""
    kw, kb = jax.random.split(key)
    bound = 1.0 / (in_features ** 0.5)
    w = jax.random.uniform(kw, (out_features, in_features), jnp.float32,
                           -bound, bound)
    b = jax.random.uniform(kb, (out_features,), jnp.float32, -bound, bound)
    return w, b


def make_params(key, num_question, encoder_hidden_size, bottleneck_size):
    k1, k2, k3, k4 = jax.random.split(key, 4)
    g_w, g_b = _init_linear(k1, encoder_hidden_size, num_question)
    e_w, e_b = _init_linear(k2, bottleneck_size, encoder_hidden_size)
    d_w, d_b = _init_linear(k3, encoder_hidden_size, bottleneck_size)
    h_w, h_b = _init_linear(k4, num_question, encoder_hidden_size)
    return {"g_w": g_w, "g_b": g_b,
            "encode_w": e_w, "encode_b": e_b,
            "decode_w": d_w, "decode_b": d_b,
            "h_w": h_w, "h_b": h_b}


def _reference_forward_f32(x, p):
    """Pure-f32 PyTorch-equivalent reference (reg=None path)."""
    h1 = jnp.maximum(x @ p["g_w"].T + p["g_b"], 0.0)
    h2 = jax.nn.sigmoid(h1 @ p["encode_w"].T + p["encode_b"])
    d = h2 @ p["decode_w"].T + p["decode_b"]
    return jax.nn.sigmoid(d @ p["h_w"].T + p["h_b"])


def _reference_forward_matched(x, p):
    """Precision-matched reference: bf16 MXU operands, f32 accum, fused decode@h."""
    bf, f32 = jnp.bfloat16, jnp.float32
    wg = p["g_w"].T.astype(bf)
    we = p["encode_w"].T.astype(bf)
    wdh = (p["decode_w"].T @ p["h_w"].T).astype(bf)
    bdh = p["decode_b"] @ p["h_w"].T + p["h_b"]
    h1 = jnp.maximum(
        jnp.dot(x.astype(bf), wg, preferred_element_type=f32) + p["g_b"], 0.0)
    h2 = jax.nn.sigmoid(
        jnp.dot(h1.astype(bf), we, preferred_element_type=f32) + p["encode_b"])
    o = jnp.dot(h2.astype(bf), wdh, preferred_element_type=f32) + bdh
    return jax.nn.sigmoid(o)


if __name__ == "__main__":
    # Small shapes consistent with the module's forward (user vectors of
    # length num_question).
    batch = 16
    num_question = 64
    encoder_hidden_size = 32
    bottleneck_size = 16

    key = jax.random.PRNGKey(0)
    kx, kp = jax.random.split(key)
    x = jax.random.normal(kx, (batch, num_question), jnp.float32)
    params = make_params(kp, num_question, encoder_hidden_size, bottleneck_size)

    out = autoencoder_forward(x, params)
    out = jax.block_until_ready(out)
    assert out.shape == (batch, num_question)
    assert out.dtype == jnp.bfloat16
    out_f32 = out.astype(jnp.float32)

    # Tight check vs a precision-matched (bf16-operand, fused decode@h) reference.
    ref_matched = _reference_forward_matched(x, params)
    assert jnp.allclose(out_f32, ref_matched, atol=1e-2, rtol=1e-2), \
        "mismatch vs precision-matched reference"

    # Sanity check vs the pure-f32 PyTorch-equivalent reference.
    ref_f32 = _reference_forward_f32(x, params)
    assert jnp.allclose(out_f32, ref_f32, atol=3e-2, rtol=3e-2), \
        "mismatch vs f32 reference"

    # TODO(synk): Dropout path (reg='Dropout') not implemented; the default
    # forward (reg=None) has no dropout, matching this kernel.
    print("KERNEL_OK")
</pallas_src>

<mosaic_0001>
module attributes {stable_mosaic.version = 11 : i64} {
  func.func @_autoencoder_kernel(%arg0: i32, %arg1: memref<16x64xf32, #tpu.memory_space<vmem>>, %arg2: memref<64x128xbf16, #tpu.memory_space<vmem>>, %arg3: memref<1x128xf32, #tpu.memory_space<vmem>>, %arg4: memref<128x128xbf16, #tpu.memory_space<vmem>>, %arg5: memref<1x128xf32, #tpu.memory_space<vmem>>, %arg6: memref<128x64xbf16, #tpu.memory_space<vmem>>, %arg7: memref<1x64xf32, #tpu.memory_space<vmem>>, %arg8: memref<16x64xbf16, #tpu.memory_space<vmem>>) attributes {dimension_semantics = [#tpu.dimension_semantics<parallel>], iteration_bounds = array<i64: 1>, scalar_prefetch = 0 : i64, scratch_operands = 0 : i64, tpu.core_type = #tpu.core_type<tc>, window_params = [{transform_indices = @transform_0, window_bounds = array<i64: 16, 64>}, {pipeline_mode = #tpu.pipeline_mode<synchronous>, transform_indices = @transform_1, window_bounds = array<i64: 64, 128>}, {pipeline_mode = #tpu.pipeline_mode<synchronous>, transform_indices = @transform_2, window_bounds = array<i64: 1, 128>}, {pipeline_mode = #tpu.pipeline_mode<synchronous>, transform_indices = @transform_3, window_bounds = array<i64: 128, 128>}, {pipeline_mode = #tpu.pipeline_mode<synchronous>, transform_indices = @transform_4, window_bounds = array<i64: 1, 128>}, {pipeline_mode = #tpu.pipeline_mode<synchronous>, transform_indices = @transform_5, window_bounds = array<i64: 128, 64>}, {pipeline_mode = #tpu.pipeline_mode<synchronous>, transform_indices = @transform_6, window_bounds = array<i64: 1, 64>}, {transform_indices = @transform_7, window_bounds = array<i64: 16, 64>}]} {
    %c0 = arith.constant 0 : index
    %c0_0 = arith.constant 0 : index
    %0 = vector.load %arg1[%c0, %c0_0] : memref<16x64xf32, #tpu.memory_space<vmem>>, vector<16x64xf32>
    %1 = arith.truncf %0 : vector<16x64xf32> to vector<16x64xbf16>
    %c0_1 = arith.constant 0 : index
    %c0_2 = arith.constant 0 : index
    %2 = vector.load %arg2[%c0_1, %c0_2] : memref<64x128xbf16, #tpu.memory_space<vmem>>, vector<64x128xbf16>
    %cst = arith.constant dense<0.000000e+00> : vector<16x128xf32>
    %3 = tpu.matmul %1, %2, %cst {dimension_numbers = #tpu.dot_dimension_numbers<[1], [0], [0], [1], [0, 0, 1, 1], [], []>} : vector<16x64xbf16>, vector<64x128xbf16>, vector<16x128xf32> -> vector<16x128xf32>
    %c0_3 = arith.constant 0 : index
    %c0_4 = arith.constant 0 : index
    %4 = vector.load %arg3[%c0_3, %c0_4] : memref<1x128xf32, #tpu.memory_space<vmem>>, vector<1x128xf32>
    %5 = vector.broadcast %4 : vector<1x128xf32> to vector<16x128xf32>
    %6 = arith.addf %3, %5 : vector<16x128xf32>
    %cst_5 = arith.constant 0.000000e+00 : f32
    %7 = vector.broadcast %cst_5 : f32 to vector<16x128xf32>
    %8 = arith.maximumf %6, %7 : vector<16x128xf32>
    %9 = arith.truncf %8 : vector<16x128xf32> to vector<16x128xbf16>
    %c0_6 = arith.constant 0 : index
    %c0_7 = arith.constant 0 : index
    %10 = vector.load %arg4[%c0_6, %c0_7] : memref<128x128xbf16, #tpu.memory_space<vmem>>, vector<128x128xbf16>
    %cst_8 = arith.constant dense<0.000000e+00> : vector<16x128xf32>
    %11 = tpu.matmul %9, %10, %cst_8 {dimension_numbers = #tpu.dot_dimension_numbers<[1], [0], [0], [1], [0, 0, 1, 1], [], []>} : vector<16x128xbf16>, vector<128x128xbf16>, vector<16x128xf32> -> vector<16x128xf32>
    %c0_9 = arith.constant 0 : index
    %c0_10 = arith.constant 0 : index
    %12 = vector.load %arg5[%c0_9, %c0_10] : memref<1x128xf32, #tpu.memory_space<vmem>>, vector<1x128xf32>
    %13 = vector.broadcast %12 : vector<1x128xf32> to vector<16x128xf32>
    %14 = arith.addf %11, %13 : vector<16x128xf32>
    %15 = arith.negf %14 : vector<16x128xf32>
    %16 = math.exp %15 : vector<16x128xf32>
    %cst_11 = arith.constant 1.000000e+00 : f32
    %17 = vector.broadcast %cst_11 : f32 to vector<16x128xf32>
    %18 = arith.addf %17, %16 : vector<16x128xf32>
    %19 = arith.divf %17, %18 : vector<16x128xf32>
    %20 = arith.truncf %19 : vector<16x128xf32> to vector<16x128xbf16>
    %c0_12 = arith.constant 0 : index
    %c0_13 = arith.constant 0 : index
    %21 = vector.load %arg6[%c0_12, %c0_13] : memref<128x64xbf16, #tpu.memory_space<vmem>>, vector<128x64xbf16>
    %cst_14 = arith.constant dense<0.000000e+00> : vector<16x64xf32>
    %22 = tpu.matmul %20, %21, %cst_14 {dimension_numbers = #tpu.dot_dimension_numbers<[1], [0], [0], [1], [0, 0, 1, 1], [], []>} : vector<16x128xbf16>, vector<128x64xbf16>, vector<16x64xf32> -> vector<16x64xf32>
    %c0_15 = arith.constant 0 : index
    %c0_16 = arith.constant 0 : index
    %23 = vector.load %arg7[%c0_15, %c0_16] : memref<1x64xf32, #tpu.memory_space<vmem>>, vector<1x64xf32>
    %24 = vector.broadcast %23 : vector<1x64xf32> to vector<16x64xf32>
    %25 = arith.addf %22, %24 : vector<16x64xf32>
    %26 = arith.negf %25 : vector<16x64xf32>
    %27 = math.exp %26 : vector<16x64xf32>
    %cst_17 = arith.constant 1.000000e+00 : f32
    %28 = vector.broadcast %cst_17 : f32 to vector<16x64xf32>
    %29 = arith.addf %28, %27 : vector<16x64xf32>
    %30 = arith.divf %28, %29 : vector<16x64xf32>
    %31 = arith.truncf %30 : vector<16x64xf32> to vector<16x64xbf16>
    %c0_18 = arith.constant 0 : index
    %c0_19 = arith.constant 0 : index
    %32 = vector.load %arg8[%c0_18, %c0_19] : memref<16x64xbf16, #tpu.memory_space<vmem>>, vector<16x64xbf16>
    tpu.vector_store %arg8[%c0_18, %c0_19], %31 {strides = array<i32>} : memref<16x64xbf16, #tpu.memory_space<vmem>>, vector<16x64xbf16>,
    return
  }
  func.func @transform_0(%arg0: i32) -> (i32, i32) {
    %c0_i32 = arith.constant 0 : i32
    %c0_i32_0 = arith.constant 0 : i32
    return %arg0, %c0_i32 : i32, i32
  }
  func.func @transform_1(%arg0: i32) -> (i32, i32) {
    %c0_i32 = arith.constant 0 : i32
    %c0_i32_0 = arith.constant 0 : i32
    %c0_i32_1 = arith.constant 0 : i32
    return %c0_i32, %c0_i32_0 : i32, i32
  }
  func.func @transform_2(%arg0: i32) -> (i32, i32) {
    %c0_i32 = arith.constant 0 : i32
    %c0_i32_0 = arith.constant 0 : i32
    %c0_i32_1 = arith.constant 0 : i32
    return %c0_i32, %c0_i32_0 : i32, i32
  }
  func.func @transform_3(%arg0: i32) -> (i32, i32) {
    %c0_i32 = arith.constant 0 : i32
    %c0_i32_0 = arith.constant 0 : i32
    %c0_i32_1 = arith.constant 0 : i32
    return %c0_i32, %c0_i32_0 : i32, i32
  }
  func.func @transform_4(%arg0: i32) -> (i32, i32) {
    %c0_i32 = arith.constant 0 : i32
    %c0_i32_0 = arith.constant 0 : i32
    %c0_i32_1 = arith.constant 0 : i32
    return %c0_i32, %c0_i32_0 : i32, i32
  }
  func.func @transform_5(%arg0: i32) -> (i32, i32) {
    %c0_i32 = arith.constant 0 : i32
    %c0_i32_0 = arith.constant 0 : i32
    %c0_i32_1 = arith.constant 0 : i32
    return %c0_i32, %c0_i32_0 : i32, i32
  }
  func.func @transform_6(%arg0: i32) -> (i32, i32) {
    %c0_i32 = arith.constant 0 : i32
    %c0_i32_0 = arith.constant 0 : i32
    %c0_i32_1 = arith.constant 0 : i32
    return %c0_i32, %c0_i32_0 : i32, i32
  }
  func.func @transform_7(%arg0: i32) -> (i32, i32) {
    %c0_i32 = arith.constant 0 : i32
    %c0_i32_0 = arith.constant 0 : i32
    return %arg0, %c0_i32 : i32, i32
  }
}

</mosaic_0001>

<bundles_post_ra>
// kernel: tpu_custom_call.1
= control target key start
LH: loop header
LB: loop body
LE: loop exit
PB: predicated region body
PF: predicated region fallthrough
CT: control target
= control target key end

     0   :  { %12 = vsyncpa [#allocation3], 0  ;;  %s775_s0 = inlined_call_operand.hbm [shape: f32[16,64], index: 0, kind: input, shape index: {}]   ;;  %s776_s1 = inlined_call_operand.vmem [shape: bf16[64,128], index: 1, kind: input, shape index: {}]   ;;  %s777_s2 = inlined_call_operand.vmem [shape: f32[1,128], index: 2, kind: input, shape index: {}]   ;;  %s778_s3 = inlined_call_operand.vmem [shape: bf16[128,128], index: 3, kind: input, shape index: {}]   ;;  %s779_s4 = inlined_call_operand.vmem [shape: f32[1,128], index: 4, kind: input, shape index: {}]   ;;  %s780_s5 = inlined_call_operand.vmem [shape: bf16[128,64], index: 5, kind: input, shape index: {}]   ;;  %s781_s6 = inlined_call_operand.vmem [shape: f32[1,64], index: 6, kind: input, shape index: {}]   ;;  %s782_s7 = inlined_call_operand.hbm [shape: bf16[16,64], index: 7, kind: output, shape index: {}]  }
   0x1   :  { %13 = vsyncpa [#allocation4], 0  ;;  %s608_s24 = smov [#allocation2]   ;;  %s560_s28 = scalar_lea.hbm %s775_s0, 256 }
   0x2   :  { %s19_s25 = sshll.u32 %s608_s24, 4  ;;  %p561_p0 = scmp.ne.s32.totalorder %s775_s0, %s560_s28  ;;  %s20_s25 = int_to_ptr.vmem [resolvable:$true] %s19_s25 }
   0x3   :  { %p564_p1 = scmp.lt.u32.totalorder %s560_s28, %s775_s0 }
   0x5   :  { %p566_p2 = pnand %p564_p1, %p561_p0 }
   0x7   :  { %569 = shalt.err (!%p566_p2)
}
   0x8   :  { %s570_s10 = scalar_lea.vmem %s20_s25, 256  ;;  %p575_p4 = scmp.lt.s32.totalorder %s20_s25, %s20_s25 }
   0x9   :  { %p571_p3 = scmp.ne.s32.totalorder %s20_s25, %s570_s10  ;;  %p576_p5 = scmp.lt.s32.totalorder %s570_s10, %s570_s10 }
   0xb   :  { %p577_p6 = por %p576_p5, %p575_p4 }
   0xd   :  { %p578_p7 = pnand %p577_p6, %p571_p3 }
   0xf   :  { %581 = shalt.err (!%p578_p7)
}
  0x10   :  { %s609_s11 = smov 128   ;;  %s610_s12 = smov 8  }
  0x11   :  { %25 = dma.hbm_to_vmem [thread:$0]  %s775_s0, 256, %s20_s25, [#allocation3], %s609_s11, %s609_s11, %s610_s12  }
  0x12   :  { %604 = dma.done.wait [#allocation3], 256  }
  0x13   :  { %605 = vsyncadd [#allocation3], 4294967040  ;;  %v611_v0 = vmov 0.0   ;;  %vm612_vm0 = vmmov 0   ;;  %v524_v1 = vld [vmem:[%s776_s1] sm:$0xff]   ;;  %v525_v2 = vld [vmem:[%s776_s1 + $0x8] sm:$0xff]  }
  0x14   :  { %464 = vmatprep.subr.bf16.mxu0 %v611_v0  ;;  %472 = vmatprep.mubr.msk.bf16.mxu0 %vm612_vm0, %v611_v0  ;;  %v528_v3 = vld [vmem:[%s778_s3] sm:$0xff]   ;;  %v526_v4 = vld [vmem:[%s776_s1 + $0x10] sm:$0xff]   ;;  %v529_v5 = vld [vmem:[%s778_s3 + $0x8] sm:$0xff]   ;;  %vm84_vm1 = vcmask 523264   ;;  %s613_s30 = smov [#allocation5]   ;;  %vm389_vm2 = vcmask 519168  }
  0x15   :  { %476 = vmatprep.subr.bf16.mxu1 %v611_v0  ;;  %492 = vmatprep.mubr.msk.bf16.mxu1 %vm612_vm0, %v611_v0  ;;  %v527_v6 = vld [vmem:[%s776_s1 + $0x18] sm:$0xff]   ;;  %v42_v7 = vld [vmem:[#allocation2] sm:$0xff]  ;;  %v43_v8 = vld [vmem:[#allocation2 + $0x8] sm:$0xff]  ;;  %s397_s8 = sshll.u32 %s613_s30, 4  ;;  %s398_s8 = int_to_ptr.vmem [resolvable:$true] %s397_s8 }
  0x16   :  { %465 = vmatpush3.bf16.msra.mxu0 %v524_v1  ;;  %477 = vmatpush3.bf16.msra.mxu1 %v528_v3  ;;  %v530_v9 = vld [vmem:[%s778_s3 + $0x10] sm:$0xff]   ;;  %v44_v10 = vpack.c.bf16 %v43_v8, %v42_v7  ;;  %v531_v11 = vld [vmem:[%s778_s3 + $0x18] sm:$0xff]   ;;  %v532_v12 = vld [vmem:[%s778_s3 + $0x20] sm:$0xff]   ;;  %p587_p9 = scmp.lt.s32.totalorder %s398_s8, %s398_s8 }
  0x17   :  { %466 = vmatprep.subr.bf16.mxu0 %v611_v0  ;;  %478 = vmatprep.subr.bf16.mxu1 %v611_v0  ;;  %v533_v13 = vld [vmem:[%s778_s3 + $0x28] sm:$0xff]   ;;  %v534_v14 = vld [vmem:[%s778_s3 + $0x30] sm:$0xff]   ;;  %v535_v15 = vld [vmem:[%s778_s3 + $0x38] sm:$0xff]  }
  0x18   :  { %v409_v16 = vld [vmem:[%s777_s2] ss:$0 sm:$0xff]  ;;  %v537_v27 = vld [vmem:[%s780_s5 + $0x8] sm:$0xff]   ;;  %v538_v28 = vld [vmem:[%s780_s5 + $0x10] sm:$0xff]  }
  0x19   :  { %v536_v26 = vld [vmem:[%s780_s5] sm:$0xff]   ;;  %v539_v29 = vld [vmem:[%s780_s5 + $0x18] sm:$0xff]   ;;  %v541_v31 = vld [vmem:[%s780_s5 + $0x28] sm:$0xff]  }
  0x1a   :  { %467 = vmatpush3.bf16.msra.mxu0 %v525_v2  ;;  %479 = vmatpush3.bf16.msra.mxu1 %v529_v5  ;;  %v540_v30 = vld [vmem:[%s780_s5 + $0x20] sm:$0xff]   ;;  %v542_v32 = vld [vmem:[%s780_s5 + $0x30] sm:$0xff]   ;;  %v543_v33 = vld [vmem:[%s780_s5 + $0x38] sm:$0xff]  }
  0x1b   :  { %468 = vmatprep.subr.bf16.mxu0 %v611_v0  ;;  %480 = vmatprep.subr.bf16.mxu1 %v611_v0  ;;  %v415_v34 = vld [vmem:[%s779_s4] ss:$0 sm:$0xff] }
  0x1c   :  { %v426_v50 = vld [vmem:[%s781_s6] ss:$0 sm:$0xff]  ;;  %s582_s6 = scalar_lea.vmem %s398_s8, 128 }
  0x1d   :  { %p583_p8 = scmp.ne.s32.totalorder %s398_s8, %s582_s6  ;;  %p588_p10 = scmp.lt.s32.totalorder %s582_s6, %s582_s6 }
  0x1e   :  { %469 = vmatpush3.bf16.msra.mxu0 %v526_v4  ;;  %481 = vmatpush3.bf16.msra.mxu1 %v530_v9 }
  0x1f   :  { %470 = vmatprep.subr.bf16.mxu0 %v611_v0  ;;  %482 = vmatprep.subr.bf16.mxu1 %v611_v0  ;;  %p589_p11 = por %p588_p10, %p587_p9 }
  0x21   :  { %p590_p12 = pnand %p589_p11, %p583_p8 }
  0x22   :  { %471 = vmatpush3.bf16.msra.mxu0 %v527_v6  ;;  %483 = vmatpush3.bf16.msra.mxu1 %v531_v11 }
  0x23   :  { %496 = vmatprep.subr.bf16.mxu0 %v611_v0  ;;  %484 = vmatprep.subr.bf16.mxu1 %v611_v0 }
  0x25   :  { %473 = vmatmul.mubr.msk.bf16.vlgmr.msra.gmra.mrb[0].mxu0 %vm84_vm1, %v44_v10 }
  0x26   :  { %512 = vmatprep.mubr.msk.bf16.mxu0 %vm612_vm0, %v611_v0  ;;  %485 = vmatpush3.bf16.msra.mxu1 %v532_v12 }
  0x27   :  { %486 = vmatprep.subr.bf16.mxu1 %v611_v0  ;;  %497 = vmatpush3.bf16.msra.mxu0 %v536_v26 }
  0x28   :  { %498 = vmatprep.subr.bf16.mxu0 %v611_v0 }
  0x2a   :  { %487 = vmatpush3.bf16.msra.mxu1 %v533_v13 }
  0x2b   :  { %488 = vmatprep.subr.bf16.mxu1 %v611_v0  ;;  %499 = vmatpush3.bf16.msra.mxu0 %v537_v27 }
  0x2c   :  { %500 = vmatprep.subr.bf16.mxu0 %v611_v0 }
  0x2e   :  { %489 = vmatpush3.bf16.msra.mxu1 %v534_v14 }
  0x2f   :  { %490 = vmatprep.subr.bf16.mxu1 %v611_v0  ;;  %501 = vmatpush3.bf16.msra.mxu0 %v538_v28 }
  0x30   :  { %502 = vmatprep.subr.bf16.mxu0 %v611_v0 }
  0x32   :  { %491 = vmatpush3.bf16.msra.mxu1 %v535_v15 }
  0x33   :  { %503 = vmatpush3.bf16.msra.mxu0 %v539_v29 }
  0x34   :  { %504 = vmatprep.subr.bf16.mxu0 %v611_v0 }
  0x37   :  { %505 = vmatpush3.bf16.msra.mxu0 %v540_v30 }
  0x38   :  { %506 = vmatprep.subr.bf16.mxu0 %v611_v0 }
  0x3b   :  { %507 = vmatpush3.bf16.msra.mxu0 %v541_v31 }
  0x3c   :  { %508 = vmatprep.subr.bf16.mxu0 %v611_v0 }
  0x3f   :  { %509 = vmatpush3.bf16.msra.mxu0 %v542_v32 }
  0x40   :  { %510 = vmatprep.subr.bf16.mxu0 %v611_v0 }
  0x43   :  { %511 = vmatpush3.bf16.msra.mxu0 %v543_v33 }
  0xf8   :  { %v122_v17 = vpop.f32.mrb[0].mxu0 }
  0xf9   :  { %v123_v18 = vadd.f32 %v409_v16, %v122_v17  ;;  %v474_v19 = vpop.f32.mrb[1].mxu0 }
  0xfa   :  { %v125_v20 = vpop.f32.mrb[2].mxu0 }
  0xfb   :  { %v126_v21 = vadd.f32 %v409_v16, %v125_v20  ;;  %v475_v22 = vpop.f32.mrb[3].mxu0  ;;  %v129_v23 = vmax.f32 %v123_v18, 0.0 }
  0xfd   :  { %v130_v24 = vmax.f32 %v126_v21, 0.0 }
  0xff   :  { %v131_v25 = vpack.c.bf16 %v130_v24, %v129_v23 }
 0x101   :  { %493 = vmatmul.mubr.bf16.vlgmr.msra.gmra.mrb[0].mxu1 %v131_v25 }
 0x1d4   :  { %v237_v35 = vpop.f32.mrb[0].mxu1 }
 0x1d5   :  { %v238_v36 = vadd.f32 %v415_v34, %v237_v35  ;;  %v494_v37 = vpop.f32.mrb[1].mxu1 }
 0x1d6   :  { %v240_v38 = vpop.f32.mrb[2].mxu1 }
 0x1d7   :  { %v424_v39 = vmul.f32 -1.442695, %v238_v36  ;;  %v241_v40 = vadd.f32 %v415_v34, %v240_v38  ;;  %v495_v41 = vpop.f32.mrb[3].mxu1 }
 0x1d9   :  { %544 = vpow2.f32 %v424_v39  ;;  %v425_v42 = vmul.f32 -1.442695, %v241_v40 }
 0x1db   :  { %546 = vpow2.f32 %v425_v42 }
 0x1e3   :  { %v545_v43 = vpop.eup %544 }
 0x1e4   :  { %v250_v44 = vadd.f32 1.0, %v545_v43 }
 0x1e5   :  { %v547_v45 = vpop.eup %546 }
 0x1e6   :  { %v251_v46 = vadd.f32 1.0, %v547_v45  ;;  %548 = vrcp.f32 %v250_v44 }
 0x1e8   :  { %550 = vrcp.f32 %v251_v46 }
 0x1f0   :  { %v549_v47 = vpop.eup %548 }
 0x1f2   :  { %v551_v48 = vpop.eup %550 }
 0x1f3   :  { %v256_v49 = vpack.c.bf16 %v551_v48, %v549_v47 }
 0x1f5   :  { %513 = vmatmul.mubr.bf16.vlgmr.msra.gmra.mrb[4].mxu0 %v256_v49 }
 0x2c8   :  { %v362_v51 = vpop.f32.mrb[4].mxu0 }
 0x2c9   :  { %v363_v52 = vadd.f32 %v426_v50, %v362_v51  ;;  %v514_v53 = vpop.f32.mrb[5].mxu0 }
 0x2ca   :  { %v365_v54 = vpop.f32.mrb[6].mxu0 }
 0x2cb   :  { %v435_v55 = vmul.f32 -1.442695, %v363_v52  ;;  %v366_v56 = vadd.f32 %v426_v50, %v365_v54  ;;  %v515_v57 = vpop.f32.mrb[7].mxu0 }
 0x2cd   :  { %552 = vpow2.f32 %v435_v55  ;;  %v436_v58 = vmul.f32 -1.442695, %v366_v56 }
 0x2cf   :  { %554 = vpow2.f32 %v436_v58 }
 0x2d7   :  { %v553_v59 = vpop.eup %552 }
 0x2d8   :  { %v375_v60 = vadd.f32 1.0, %v553_v59 }
 0x2d9   :  { %v555_v61 = vpop.eup %554 }
 0x2da   :  { %556 = vrcp.f32 %v375_v60  ;;  %v376_v62 = vadd.f32 1.0, %v555_v61 }
 0x2dc   :  { %558 = vrcp.f32 %v376_v62 }
 0x2e4   :  { %v557_v63 = vpop.eup %556 }
 0x2e5   :  { %v439_v0 = vpack.c.bf16 %v557_v63, %v557_v63 }
 0x2e6   :  { %v559_v1 = vpop.eup %558 }
 0x2e7   :  { %v440_v2 = vpack.c.bf16 %v559_v1, %v559_v1  ;;  %390 = vst.msk [vmem:[#allocation5] sm:$0xf] %vm389_vm2, %v439_v0 }
 0x2e9   :  { %391 = vst.msk [vmem:[#allocation5 + $0x4] sm:$0xf] %vm389_vm2, %v440_v2 }
 0x2ea   :  { %593 = shalt.err (!%p590_p12)
}
 0x2eb   :  { %s594_s11 = scalar_lea.hbm %s782_s7, 128 }
 0x2ec   :  { %p595_p13 = scmp.ne.s32.totalorder %s782_s7, %s594_s11  ;;  %p598_p0 = scmp.lt.u32.totalorder %s594_s11, %s782_s7 }
 0x2ee   :  { %p600_p1 = pnand %p598_p0, %p595_p13 }
 0x2f0   :  { %603 = shalt.err (!%p600_p1)
}
 0x2f1   :  { %s614_s16 = smov 64   ;;  %s615_s0 = smov 4  }
 0x2f2   :  { %403 = dma.vmem_to_hbm [thread:$0]  %s398_s8, 128, %s782_s7, [#allocation4], %s614_s16, %s614_s16, %s615_s0  }
 0x2f3   :  { %606 = dma.done.wait [#allocation4], 128  }
 0x2f4   :  { %607 = vsyncadd [#allocation4], 4294967168 }
 0x2f5   :  { %407 = vsyncpa [#allocation3], 1 }
 0x2f6   :  { %408 = vsyncpa [#allocation4], 1 }

</bundles_post_ra>
